<compile_context>
chip_gen: v6e
topology: v6e:2x2x1
jax: 0.10.0
libtpu: 0.0.40
codegen_flags: <defaults>
</compile_context>

<pallas_src>
import functools

import jax
import jax.numpy as jnp
from jax.experimental import pallas as pl
from jax.experimental.pallas import tpu as pltpu


def _mlp_kernel(x_ref,
                w1_ref, b1_ref,
                w2_ref, b2_ref,
                w3_ref, b3_ref,
                w4t_ref, b4_ref,
                o_ref):
    """Whole 4-layer MLP for one (2, block_b) batch tile, batch on lanes."""
    x = x_ref[...]                                   # (2, Bt)

    # ---- Layer 1: Linear(2, H) on the VPU (K=2 -> two broadcast FMAs). ----
    h = (w1_ref[:, 0:1] * x[0:1, :]
         + w1_ref[:, 1:2] * x[1:2, :]
         + b1_ref[...])                              # (H, Bt)
    h = jnp.maximum(h, 0.0)

    # ---- Layers 2 & 3: Linear(H, H) on the MXU, f32 accumulation. ----
    h = jnp.dot(w2_ref[...], h, preferred_element_type=jnp.float32) + b2_ref[...]
    h = jnp.maximum(h, 0.0)

    h = jnp.dot(w3_ref[...], h, preferred_element_type=jnp.float32) + b3_ref[...]
    h = jnp.maximum(h, 0.0)

    # ---- Layer 4: Linear(H, 2) on VPU + XLU (N=2 -> two sublane reductions). ----
    o0 = jnp.sum(h * w4t_ref[:, 0:1], axis=0, keepdims=True)   # (1, Bt)
    o1 = jnp.sum(h * w4t_ref[:, 1:2], axis=0, keepdims=True)   # (1, Bt)
    out = jnp.concatenate([o0, o1], axis=0) + b4_ref[...]      # (2, Bt)

    o_ref[...] = out.astype(o_ref.dtype)


@functools.partial(jax.jit, static_argnames=("block_b",))
def generator_toy_forward(x, params, block_b=256):
    """params = (w1, b1, w2, b2, w3, b3, w4t, b4); x: (B, 2) float32 -> (B, 2)."""
    B, in_dim = x.shape
    assert in_dim == 2, "Generator_toy expects 2 input features"
    assert block_b % 128 == 0, "block_b must be a multiple of 128 (lane width)"

    w1, b1, w2, b2, w3, b3, w4t, b4 = params
    H = w2.shape[0]
    out_dim = b4.shape[0]

    # Flip to batch-on-lanes layout and pad batch up to a tile multiple.
    n_tiles = pl.cdiv(B, block_b)
    Bp = n_tiles * block_b
    xt = x.T                                          # (2, B)
    if Bp != B:
        xt = jnp.pad(xt, ((0, 0), (0, Bp - B)))       # (2, Bp)

    x_spec = pl.BlockSpec((in_dim, block_b), lambda i: (0, i))
    o_spec = pl.BlockSpec((out_dim, block_b), lambda i: (0, i))

    def full_spec(a):
        # Small constant weights/biases: resident whole, block index fixed at 0.
        return pl.BlockSpec(a.shape, lambda i: (0,) * a.ndim)

    param_specs = [full_spec(p) for p in params]

    # Advisory cost estimate: streaming, memory-bound MLP.
    flops = 2 * Bp * (in_dim * H + H * H + H * H + H * out_dim)
    bytes_accessed = (Bp * (in_dim + out_dim) + sum(int(p.size) for p in params)) * 4
    cost = pl.CostEstimate(flops=flops, transcendentals=0,
                           bytes_accessed=bytes_accessed)

    out_t = pl.pallas_call(
        _mlp_kernel,
        out_shape=jax.ShapeDtypeStruct((out_dim, Bp), jnp.float32),
        grid_spec=pltpu.PrefetchScalarGridSpec(
            num_scalar_prefetch=0,
            grid=(n_tiles,),
            in_specs=[x_spec] + param_specs,
            out_specs=o_spec,
        ),
        compiler_params=pltpu.CompilerParams(
            dimension_semantics=("parallel",)),   # shard batch tiles across TCs (v7x)
        cost_estimate=cost,
    )(xt, w1, b1, w2, b2, w3, b3, w4t, b4)

    # Back to the PyTorch (B, 2) convention; drop batch padding.
    return out_t[:, :B].T


def init_params(key, hidden_dim):
    """Deterministic init mimicking torch.nn.Linear default U(-1/sqrt(fan_in), +).

    Layout matches the kernel: w1/w2/w3 are (out, in); w4 is stored transposed
    (in, out); biases are (out, 1).
    """
    H = hidden_dim
    layer_specs = [
        ((H, 2), (H, 1), 2),   # Linear(2, H)
        ((H, H), (H, 1), H),   # Linear(H, H)
        ((H, H), (H, 1), H),   # Linear(H, H)
        ((H, 2), (2, 1), H),   # Linear(H, 2), weight stored transposed (in, out)
    ]
    params = []
    for w_shape, b_shape, fan_in in layer_specs:
        key, kw, kb = jax.random.split(key, 3)
        bound = 1.0 / jnp.sqrt(jnp.float32(fan_in))
        params.append(jax.random.uniform(kw, w_shape, jnp.float32, -bound, bound))
        params.append(jax.random.uniform(kb, b_shape, jnp.float32, -bound, bound))
    return tuple(params)


def reference_forward(x, params):
    """Pure-JAX reference in the PyTorch orientation: x @ W.T + b."""
    w1, b1, w2, b2, w3, b3, w4t, b4 = params
    h = jnp.maximum(x @ w1.T + b1.T, 0.0)
    h = jnp.maximum(h @ w2.T + b2.T, 0.0)
    h = jnp.maximum(h @ w3.T + b3.T, 0.0)
    return h @ w4t + b4.T


if __name__ == "__main__":
    hidden_dim = 32
    batch = 300          # deliberately not a tile multiple -> exercises padding path
    block_b = 128        # small demo tile (multiple of 128); default is 256

    key = jax.random.PRNGKey(0)
    key, kx = jax.random.split(key)
    x = jax.random.normal(kx, (batch, 2), dtype=jnp.float32)

    params = init_params(key, hidden_dim)

    out = generator_toy_forward(x, params, block_b=block_b)
    out = jax.block_until_ready(out)

    ref = reference_forward(x, params)
    assert out.shape == (batch, 2), out.shape
    # Tolerance accounts for MXU default-precision rounding differing between the
    # kernel's (H,H)@(H,B) orientation and the reference's (B,H)@(H,H) orientation.
    assert jnp.allclose(out, ref, atol=1e-2, rtol=1e-2), "mismatch vs JAX reference"

    print("KERNEL_OK")
</pallas_src>

<mosaic_0001>
module attributes {stable_mosaic.version = 11 : i64} {
  func.func @_mlp_kernel(%arg0: i32, %arg1: memref<2x128xf32, #tpu.memory_space<vmem>>, %arg2: memref<32x2xf32, #tpu.memory_space<vmem>>, %arg3: memref<32x1xf32, #tpu.memory_space<vmem>>, %arg4: memref<32x32xf32, #tpu.memory_space<vmem>>, %arg5: memref<32x1xf32, #tpu.memory_space<vmem>>, %arg6: memref<32x32xf32, #tpu.memory_space<vmem>>, %arg7: memref<32x1xf32, #tpu.memory_space<vmem>>, %arg8: memref<32x2xf32, #tpu.memory_space<vmem>>, %arg9: memref<2x1xf32, #tpu.memory_space<vmem>>, %arg10: memref<2x128xf32, #tpu.memory_space<vmem>>) attributes {dimension_semantics = [#tpu.dimension_semantics<parallel>], iteration_bounds = array<i64: 3>, scalar_prefetch = 0 : i64, scratch_operands = 0 : i64, tpu.core_type = #tpu.core_type<tc>, window_params = [{transform_indices = @transform_0, window_bounds = array<i64: 2, 128>}, {pipeline_mode = #tpu.pipeline_mode<synchronous>, transform_indices = @transform_1, window_bounds = array<i64: 32, 2>}, {pipeline_mode = #tpu.pipeline_mode<synchronous>, transform_indices = @transform_2, window_bounds = array<i64: 32, 1>}, {pipeline_mode = #tpu.pipeline_mode<synchronous>, transform_indices = @transform_3, window_bounds = array<i64: 32, 32>}, {pipeline_mode = #tpu.pipeline_mode<synchronous>, transform_indices = @transform_4, window_bounds = array<i64: 32, 1>}, {pipeline_mode = #tpu.pipeline_mode<synchronous>, transform_indices = @transform_5, window_bounds = array<i64: 32, 32>}, {pipeline_mode = #tpu.pipeline_mode<synchronous>, transform_indices = @transform_6, window_bounds = array<i64: 32, 1>}, {pipeline_mode = #tpu.pipeline_mode<synchronous>, transform_indices = @transform_7, window_bounds = array<i64: 32, 2>}, {pipeline_mode = #tpu.pipeline_mode<synchronous>, transform_indices = @transform_8, window_bounds = array<i64: 2, 1>}, {transform_indices = @transform_9, window_bounds = array<i64: 2, 128>}]} {
    %c0 = arith.constant 0 : index
    %c0_0 = arith.constant 0 : index
    %0 = vector.load %arg1[%c0, %c0_0] : memref<2x128xf32, #tpu.memory_space<vmem>>, vector<2x128xf32>
    %c0_1 = arith.constant 0 : index
    %c0_2 = arith.constant 0 : index
    %1 = vector.load %arg2[%c0_1, %c0_2] : memref<32x2xf32, #tpu.memory_space<vmem>>, vector<32x1xf32>
    %2 = vector.extract_strided_slice %0 {offsets = [0, 0], sizes = [1, 128], strides = [1, 1]} : vector<2x128xf32> to vector<1x128xf32>
    %3 = vector.broadcast %1 : vector<32x1xf32> to vector<32x128xf32>
    %4 = vector.broadcast %2 : vector<1x128xf32> to vector<32x128xf32>
    %5 = arith.mulf %3, %4 : vector<32x128xf32>
    %c0_3 = arith.constant 0 : index
    %c1 = arith.constant 1 : index
    %6 = vector.load %arg2[%c0_3, %c1] : memref<32x2xf32, #tpu.memory_space<vmem>>, vector<32x1xf32>
    %7 = vector.extract_strided_slice %0 {offsets = [1, 0], sizes = [1, 128], strides = [1, 1]} : vector<2x128xf32> to vector<1x128xf32>
    %8 = vector.broadcast %6 : vector<32x1xf32> to vector<32x128xf32>
    %9 = vector.broadcast %7 : vector<1x128xf32> to vector<32x128xf32>
    %10 = arith.mulf %8, %9 : vector<32x128xf32>
    %11 = arith.addf %5, %10 : vector<32x128xf32>
    %c0_4 = arith.constant 0 : index
    %c0_5 = arith.constant 0 : index
    %12 = vector.load %arg3[%c0_4, %c0_5] : memref<32x1xf32, #tpu.memory_space<vmem>>, vector<32x1xf32>
    %13 = vector.broadcast %12 : vector<32x1xf32> to vector<32x128xf32>
    %14 = arith.addf %11, %13 : vector<32x128xf32>
    %cst = arith.constant 0.000000e+00 : f32
    %15 = vector.broadcast %cst : f32 to vector<32x128xf32>
    %16 = arith.maximumf %14, %15 : vector<32x128xf32>
    %c0_6 = arith.constant 0 : index
    %c0_7 = arith.constant 0 : index
    %17 = vector.load %arg4[%c0_6, %c0_7] : memref<32x32xf32, #tpu.memory_space<vmem>>, vector<32x32xf32>
    %cst_8 = arith.constant dense<0.000000e+00> : vector<32x128xf32>
    %18 = tpu.matmul %17, %16, %cst_8 {dimension_numbers = #tpu.dot_dimension_numbers<[1], [0], [0], [1], [0, 0, 1, 1], [], []>} : vector<32x32xf32>, vector<32x128xf32>, vector<32x128xf32> -> vector<32x128xf32>
    %c0_9 = arith.constant 0 : index
    %c0_10 = arith.constant 0 : index
    %19 = vector.load %arg5[%c0_9, %c0_10] : memref<32x1xf32, #tpu.memory_space<vmem>>, vector<32x1xf32>
    %20 = vector.broadcast %19 : vector<32x1xf32> to vector<32x128xf32>
    %21 = arith.addf %18, %20 : vector<32x128xf32>
    %cst_11 = arith.constant 0.000000e+00 : f32
    %22 = vector.broadcast %cst_11 : f32 to vector<32x128xf32>
    %23 = arith.maximumf %21, %22 : vector<32x128xf32>
    %c0_12 = arith.constant 0 : index
    %c0_13 = arith.constant 0 : index
    %24 = vector.load %arg6[%c0_12, %c0_13] : memref<32x32xf32, #tpu.memory_space<vmem>>, vector<32x32xf32>
    %cst_14 = arith.constant dense<0.000000e+00> : vector<32x128xf32>
    %25 = tpu.matmul %24, %23, %cst_14 {dimension_numbers = #tpu.dot_dimension_numbers<[1], [0], [0], [1], [0, 0, 1, 1], [], []>} : vector<32x32xf32>, vector<32x128xf32>, vector<32x128xf32> -> vector<32x128xf32>
    %c0_15 = arith.constant 0 : index
    %c0_16 = arith.constant 0 : index
    %26 = vector.load %arg7[%c0_15, %c0_16] : memref<32x1xf32, #tpu.memory_space<vmem>>, vector<32x1xf32>
    %27 = vector.broadcast %26 : vector<32x1xf32> to vector<32x128xf32>
    %28 = arith.addf %25, %27 : vector<32x128xf32>
    %cst_17 = arith.constant 0.000000e+00 : f32
    %29 = vector.broadcast %cst_17 : f32 to vector<32x128xf32>
    %30 = arith.maximumf %28, %29 : vector<32x128xf32>
    %c0_18 = arith.constant 0 : index
    %c0_19 = arith.constant 0 : index
    %31 = vector.load %arg8[%c0_18, %c0_19] : memref<32x2xf32, #tpu.memory_space<vmem>>, vector<32x1xf32>
    %32 = vector.broadcast %31 : vector<32x1xf32> to vector<32x128xf32>
    %33 = arith.mulf %30, %32 : vector<32x128xf32>
    %cst_20 = arith.constant dense<0.000000e+00> : vector<128xf32>
    %34 = vector.multi_reduction <add>, %33, %cst_20 [0] : vector<32x128xf32> to vector<128xf32>
    %35 = vector.shape_cast %34 : vector<128xf32> to vector<1x128xf32>
    %c0_21 = arith.constant 0 : index
    %c1_22 = arith.constant 1 : index
    %36 = vector.load %arg8[%c0_21, %c1_22] : memref<32x2xf32, #tpu.memory_space<vmem>>, vector<32x1xf32>
    %37 = vector.broadcast %36 : vector<32x1xf32> to vector<32x128xf32>
    %38 = arith.mulf %30, %37 : vector<32x128xf32>
    %cst_23 = arith.constant dense<0.000000e+00> : vector<128xf32>
    %39 = vector.multi_reduction <add>, %38, %cst_23 [0] : vector<32x128xf32> to vector<128xf32>
    %40 = vector.shape_cast %39 : vector<128xf32> to vector<1x128xf32>
    %41 = tpu.concatenate %35, %40 in 0 : vector<1x128xf32>, vector<1x128xf32> -> vector<2x128xf32>
    %c0_24 = arith.constant 0 : index
    %c0_25 = arith.constant 0 : index
    %42 = vector.load %arg9[%c0_24, %c0_25] : memref<2x1xf32, #tpu.memory_space<vmem>>, vector<2x1xf32>
    %43 = vector.broadcast %42 : vector<2x1xf32> to vector<2x128xf32>
    %44 = arith.addf %41, %43 : vector<2x128xf32>
    %c0_26 = arith.constant 0 : index
    %c0_27 = arith.constant 0 : index
    %45 = vector.load %arg10[%c0_26, %c0_27] : memref<2x128xf32, #tpu.memory_space<vmem>>, vector<2x128xf32>
    tpu.vector_store %arg10[%c0_26, %c0_27], %44 {strides = array<i32>} : memref<2x128xf32, #tpu.memory_space<vmem>>, vector<2x128xf32>,
    return
  }
  func.func @transform_0(%arg0: i32) -> (i32, i32) {
    %c0_i32 = arith.constant 0 : i32
    %c0_i32_0 = arith.constant 0 : i32
    return %c0_i32, %arg0 : i32, i32
  }
  func.func @transform_1(%arg0: i32) -> (i32, i32) {
    %c0_i32 = arith.constant 0 : i32
    %c0_i32_0 = arith.constant 0 : i32
    %c0_i32_1 = arith.constant 0 : i32
    return %c0_i32, %c0_i32_0 : i32, i32
  }
  func.func @transform_2(%arg0: i32) -> (i32, i32) {
    %c0_i32 = arith.constant 0 : i32
    %c0_i32_0 = arith.constant 0 : i32
    %c0_i32_1 = arith.constant 0 : i32
    return %c0_i32, %c0_i32_0 : i32, i32
  }
  func.func @transform_3(%arg0: i32) -> (i32, i32) {
    %c0_i32 = arith.constant 0 : i32
    %c0_i32_0 = arith.constant 0 : i32
    %c0_i32_1 = arith.constant 0 : i32
    return %c0_i32, %c0_i32_0 : i32, i32
  }
  func.func @transform_4(%arg0: i32) -> (i32, i32) {
    %c0_i32 = arith.constant 0 : i32
    %c0_i32_0 = arith.constant 0 : i32
    %c0_i32_1 = arith.constant 0 : i32
    return %c0_i32, %c0_i32_0 : i32, i32
  }
  func.func @transform_5(%arg0: i32) -> (i32, i32) {
    %c0_i32 = arith.constant 0 : i32
    %c0_i32_0 = arith.constant 0 : i32
    %c0_i32_1 = arith.constant 0 : i32
    return %c0_i32, %c0_i32_0 : i32, i32
  }
  func.func @transform_6(%arg0: i32) -> (i32, i32) {
    %c0_i32 = arith.constant 0 : i32
    %c0_i32_0 = arith.constant 0 : i32
    %c0_i32_1 = arith.constant 0 : i32
    return %c0_i32, %c0_i32_0 : i32, i32
  }
  func.func @transform_7(%arg0: i32) -> (i32, i32) {
    %c0_i32 = arith.constant 0 : i32
    %c0_i32_0 = arith.constant 0 : i32
    %c0_i32_1 = arith.constant 0 : i32
    return %c0_i32, %c0_i32_0 : i32, i32
  }
  func.func @transform_8(%arg0: i32) -> (i32, i32) {
    %c0_i32 = arith.constant 0 : i32
    %c0_i32_0 = arith.constant 0 : i32
    %c0_i32_1 = arith.constant 0 : i32
    return %c0_i32, %c0_i32_0 : i32, i32
  }
  func.func @transform_9(%arg0: i32) -> (i32, i32) {
    %c0_i32 = arith.constant 0 : i32
    %c0_i32_0 = arith.constant 0 : i32
    return %c0_i32, %arg0 : i32, i32
  }
}

</mosaic_0001>

<bundles_post_ra>
// kernel: generator_toy_forward.1
= control target key start
LH: loop header
LB: loop body
LE: loop exit
PB: predicated region body
PF: predicated region fallthrough
CT: control target
= control target key end

     0   :  { %s951_s30 = smov 0   ;;  %s1080_s0 = inlined_call_operand.vmem [shape: f32[2,384], index: 0, kind: input, shape index: {}]   ;;  %s1081_s1 = inlined_call_operand.vmem [shape: f32[32,2], index: 1, kind: input, shape index: {}]   ;;  %s1082_s2 = inlined_call_operand.vmem [shape: f32[32,1], index: 2, kind: input, shape index: {}]   ;;  %s1083_s3 = inlined_call_operand.vmem [shape: f32[32,32], index: 3, kind: input, shape index: {}]   ;;  %s1084_s4 = inlined_call_operand.vmem [shape: f32[32,1], index: 4, kind: input, shape index: {}]   ;;  %s1085_s5 = inlined_call_operand.vmem [shape: f32[32,32], index: 5, kind: input, shape index: {}]   ;;  %s1086_s6 = inlined_call_operand.vmem [shape: f32[32,1], index: 6, kind: input, shape index: {}]   ;;  %s1087_s7 = inlined_call_operand.vmem [shape: f32[32,2], index: 7, kind: input, shape index: {}]   ;;  %s1088_s8 = inlined_call_operand.vmem [shape: f32[2,1], index: 8, kind: input, shape index: {}]   ;;  %s1089_s9 = inlined_call_operand.vmem [shape: f32[2,384], index: 9, kind: output, shape index: {}]  }
   0x1 LB: > { %s809_s10 = sadd.s32 4294967295, %s897_s30   ;;  %p813_p0 = scmp.ge.s32.totalorder %s897_s30, 1  ;;  %s897_s30 = sphi %s951_s30, %s19_s30  }
   0x2   : > { %p286_p1 = scmp.lt.s32.totalorder %s897_s30, 4 }
   0x4   : > { %p287_p2 = pnand %p813_p0, %p286_p1 }
   0x5   : > { %p320_p3 = scmp.lt.s32.totalorder (!%p287_p2), %s809_s10, 2 }
   0x6   : > { %290 = sbr.rel (%p287_p2) target bundleno = 605 (0x25d), region = 56 }
   0xb   : > { %v332_v0 = vld [vmem:[%s1081_s1 + $0x18] sm:$0xff]  ;;  %v331_v1 = vld [vmem:[%s1081_s1 + $0x10] sm:$0xff]  ;;  %v899_v2 = vmov 1   ;;  %v900_v3 = vmov 0   ;;  %v330_v4 = vld [vmem:[%s1081_s1 + $0x8] sm:$0xff]  ;;  %vm449_vm0 = vcmask 261120   ;;  %v353_v21 = vlaneseq }
   0xc   : > { %880 = vset.pattern.permute.xlu0 %v899_v2  ;;  %881 = vset.pattern.permute.xlu1 %v900_v3  ;;  %v329_v5 = vld [vmem:[%s1081_s1] sm:$0xff]  ;;  %v392_v6 = vld [vmem:[%s1082_s2 + $0x18] sm:$0xff]  ;;  %v390_v7 = vld [vmem:[%s1082_s2 + $0x8] sm:$0xff]  ;;  %s1091_s10 = smov (!%p320_p3, %s809_s10), 2  ;;  %vm746_vm1 = vcmask 1040384  }
   0xd   : > { %374 = vperm.xlu0 %880, %v332_v0   ;;  %345 = vperm.xlu1 %881, %v331_v1   ;;  %v428_v8 = vld [vmem:[%s1084_s4 + $0x18] sm:$0xff]  ;;  %v391_v9 = vld [vmem:[%s1082_s2 + $0x10] sm:$0xff]  ;;  %v426_v10 = vld [vmem:[%s1084_s4 + $0x8] sm:$0xff]  ;;  %s814_s11 = sshll.u32 %s1091_s10, 1  ;;  %v354_v22 = vshrl.u32 %v353_v21, 7 }
   0xe   : > { %v389_v11 = vld [vmem:[%s1082_s2] sm:$0xff]  ;;  %v427_v14 = vld [vmem:[%s1084_s4 + $0x10] sm:$0xff]  ;;  %v556_v18 = vld [vmem:[%s1086_s6 + $0x8] sm:$0xff]  ;;  %s323_s14 = scalar_lea.vmem %s1080_s0, %s814_s11  ;;  %s327_s19 = scalar_lea.vmem %s1089_s9, %s814_s11 }
   0xf   : > { %v555_v12 = vld [vmem:[%s1086_s6] sm:$0xff]  ;;  %v557_v15 = vld [vmem:[%s1086_s6 + $0x10] sm:$0xff]  ;;  %v558_v19 = vld [vmem:[%s1086_s6 + $0x18] sm:$0xff]  ;;  %v379_v25 = vsub.s32 1, %v354_v22  ;;  %v355_v26 = vsub.s32 0, %v354_v22 }
  0x10   : > { %v421_v13 = vld [vmem:[%s1083_s3] sm:$0xff]  ;;  %v681_v20 = vld [vmem:[%s1087_s7 + $0x8] sm:$0xff]  ;;  %v423_v61 = vld [vmem:[%s1083_s3 + $0x10] sm:$0xff] }
  0x11   : > { %882 = vset.pattern.permute.xlu1 %v899_v2  ;;  %366 = vperm.xlu0 %880, %v330_v4   ;;  %v425_v16 = vld [vmem:[%s1084_s4] sm:$0xff]  ;;  %v422_v60 = vld [vmem:[%s1083_s3 + $0x8] sm:$0xff]  ;;  %v424_v62 = vld [vmem:[%s1083_s3 + $0x18] sm:$0xff] }
  0x12   : > { %370 = vperm.xlu1 %882, %v331_v1   ;;  %850 = vmatprep.mubr.msk.f32.mxu0 %vm449_vm0, %v421_v13  ;;  %v680_v17 = vld [vmem:[%s1087_s7] sm:$0xff]  ;;  %v683_v1 = vld [vmem:[%s1087_s7 + $0x18] sm:$0xff] }
  0x13   : > { %v328_v28 = vld [vmem:[%s323_s14] sm:$0x3]  ;;  %v554_v21 = vld [vmem:[%s1085_s5 + $0x18] sm:$0xff] }
  0x14   : > { %v380_v30 = vrot.slane %v328_v28, %v379_v25  ;;  %v356_v31 = vrot.slane %v328_v28, %v355_v26  ;;  %v551_v63 = vld [vmem:[%s1085_s5] sm:$0xff] }
  0x15   : > { %884 = vset.pattern.permute.xlu0 %v900_v3  ;;  %864 = vmatprep.mubr.msk.f32.mxu1 %vm449_vm0, %v551_v63 }
  0x16   : > { %883 = vset.pattern.permute.xlu1 %v900_v3  ;;  %350 = vperm.xlu0 %884, %v332_v0   ;;  %v682_v0 = vld [vmem:[%s1087_s7 + $0x10] sm:$0xff] }
  0x17   : > { %340 = vperm.xlu1 %883, %v330_v4  }
  0x1a   : > { %335 = vperm.xlu0 %884, %v329_v5  }
  0x1b   : > { %410 = vperm.xlu1 %883, %v392_v6  }
  0x1e   : > { %400 = vperm.xlu0 %884, %v390_v7  }
  0x1f   : > { %885 = vset.pattern.permute.xlu1 %v899_v2 }
  0x20   : > { %362 = vperm.xlu1 %885, %v329_v5  }
  0x22   : > { %446 = vperm.xlu0 %884, %v428_v8  }
  0x24   : > { %886 = vset.pattern.permute.xlu1 %v900_v3 }
  0x25   : > { %405 = vperm.xlu1 %886, %v391_v9  }
  0x26   : > { %436 = vperm.xlu0 %884, %v426_v10  }
  0x29   : > { %395 = vperm.xlu1 %886, %v389_v11  }
  0x2a   : > { %561 = vperm.xlu0 %884, %v555_v12  }
  0x2d   : > { %441 = vperm.xlu1 %886, %v427_v14  }
  0x2e   : > { %571 = vperm.xlu0 %884, %v557_v15  }
  0x31   : > { %431 = vperm.xlu1 %886, %v425_v16  }
  0x32   : > { %686 = vperm.xlu0 %884, %v680_v17  }
  0x35   : > { %566 = vperm.xlu1 %886, %v556_v18  }
  0x36   : > { %887 = vset.pattern.permute.xlu0 %v899_v2 }
  0x37   : > { %718 = vperm.xlu0 %887, %v680_v17  }
  0x39   : > { %576 = vperm.xlu1 %886, %v558_v19   ;;  %v552_v19 = vld [vmem:[%s1085_s5 + $0x8] sm:$0xff] }
  0x3b   : > { %726 = vperm.xlu0 %887, %v682_v0  }
  0x3d   : > { %691 = vperm.xlu1 %886, %v681_v20  }
  0x3f   : > { %730 = vperm.xlu0 %887, %v683_v1  }
  0x41   : > { %888 = vset.pattern.permute.xlu1 %v899_v2  ;;  %v748_v2 = vld [vmem:[%s1088_s8] sm:$0x3] }
  0x42   : > { %722 = vperm.xlu1 %888, %v681_v20   ;;  %v553_v20 = vld [vmem:[%s1085_s5 + $0x10] sm:$0xff] }
  0x43   : > { %890 = vset.pattern.permute.xlu0 %v900_v3 }
  0x46   : > { %889 = vset.pattern.permute.xlu1 %v900_v3 }
  0x47   : > { %696 = vperm.xlu1 %889, %v682_v0  }
  0x4b   : > { %701 = vperm.xlu1 %889, %v683_v1  }
  0x4f   : > { %751 = vperm.xlu1 %889, %v748_v2  }
  0x88   : > { %v346_v23 = vpop.permute.xlu1 %345  ;;  %v375_v24 = vpop.permute.xlu0 %374 }
  0x89   : > { %v384_v32 = vmul.f32 %v380_v30, %v375_v24  ;;  %v359_v45 = vmul.f32 %v356_v31, %v346_v23 }
  0x8c   : > { %v367_v27 = vpop.permute.xlu0 %366 }
  0x8d   : > { %v371_v29 = vpop.permute.xlu1 %370  ;;  %v382_v42 = vmul.f32 %v380_v30, %v367_v27 }
  0x8e   : > { %v383_v41 = vmul.f32 %v380_v30, %v371_v29 }
  0x90   : > { %v387_v50 = vadd.f32 %v383_v41, %v359_v45 }
  0x91   : > { %v351_v33 = vpop.permute.xlu0 %350 }
  0x92   : > { %v360_v34 = vmul.f32 %v356_v31, %v351_v33  ;;  %v341_v35 = vpop.permute.xlu1 %340 }
  0x93   : > { %v358_v43 = vmul.f32 %v356_v31, %v341_v35 }
  0x94   : > { %v388_v36 = vadd.f32 %v384_v32, %v360_v34 }
  0x95   : > { %v336_v39 = vpop.permute.xlu0 %335  ;;  %v386_v48 = vadd.f32 %v382_v42, %v358_v43 }
  0x96   : > { %v411_v37 = vpop.permute.xlu1 %410  ;;  %v357_v47 = vmul.f32 %v356_v31, %v336_v39 }
  0x97   : > { %v416_v38 = vadd.f32 %v411_v37, %v388_v36 }
  0x99   : > { %v420_v40 = vmax.f32 %v416_v38, 0.0  ;;  %v401_v46 = vpop.permute.xlu0 %400 }
  0x9a   : > { %v414_v52 = vadd.f32 %v401_v46, %v386_v48 }
  0x9b   : > { %v363_v44 = vpop.permute.xlu1 %362  ;;  %842 = vmatprep.subr.mxu0 %v420_v40 }
  0x9c   : > { %843 = vmatpush3.msra.mxu0 %v420_v40  ;;  %v381_v49 = vmul.f32 %v380_v30, %v363_v44  ;;  %v418_v57 = vmax.f32 %v414_v52, 0.0 }
  0x9d   : > { %v447_v4 = vpop.permute.xlu0 %446 }
  0x9e   : > { %v385_v55 = vadd.f32 %v381_v49, %v357_v47 }
  0xa0   : > { %v406_v51 = vpop.permute.xlu1 %405 }
  0xa1   : > { %v415_v53 = vadd.f32 %v406_v51, %v387_v50  ;;  %v437_v10 = vpop.permute.xlu0 %436 }
  0xa3   : > { %v419_v54 = vmax.f32 %v415_v53, 0.0 }
  0xa4   : > { %v396_v56 = vpop.permute.xlu1 %395 }
  0xa5   : > { %v413_v58 = vadd.f32 %v396_v56, %v385_v55  ;;  %844 = vmatprep.subr.mxu0 %v419_v54  ;;  %v562_v22 = vpop.permute.xlu0 %561 }
  0xa6   : > { %845 = vmatpush3.msra.mxu0 %v419_v54 }
  0xa7   : > { %v417_v59 = vmax.f32 %v413_v58, 0.0  ;;  %846 = vmatprep.subr.mxu0 %v418_v57 }
  0xa8   : > { %847 = vmatpush3.msra.mxu0 %v418_v57  ;;  %v442_v6 = vpop.permute.xlu1 %441 }
  0xa9   : > { %848 = vmatprep.subr.mxu0 %v417_v59  ;;  %v572_v24 = vpop.permute.xlu0 %571 }
  0xaa   : > { %849 = vmatpush3.msra.mxu0 %v417_v59 }
  0xab   : > { %851 = vmatmul.mubr.msk.f32.vlgmr.msra.gmra.mxu0 %vm449_vm0, %v422_v60 }
  0xac   : > { %853 = vmatprep.mubr.msk.f32.mxu0 %vm449_vm0, %v423_v61  ;;  %v432_v15 = vpop.permute.xlu1 %431 }
  0xad   : > { %v687_v26 = vpop.permute.xlu0 %686 }
  0xaf   : > { %854 = vmatmul.mubr.msk.f32.gmra.mxu0 %vm449_vm0, %v424_v62 }
  0xb0   : > { %v567_v23 = vpop.permute.xlu1 %566 }
  0xb2   : > { %v719_v30 = vpop.permute.xlu0 %718 }
  0xb4   : > { %v577_v25 = vpop.permute.xlu1 %576 }
  0xb6   : > { %v727_v40 = vpop.permute.xlu0 %726 }
  0xb8   : > { %v692_v27 = vpop.permute.xlu1 %691 }
  0xba   : > { %v731_v53 = vpop.permute.xlu0 %730 }
  0xbd   : > { %v723_v29 = vpop.permute.xlu1 %722 }
  0xc2   : > { %v697_v39 = vpop.permute.xlu1 %696 }
  0xc6   : > { %v702_v52 = vpop.permute.xlu1 %701 }
 0x16b   : > { %v852_v5 = vpop.f32.mrf.mxu0 }
 0x16c   : > { %v534_v12 = vadd.f32 %v852_v5, %v437_v10 }
 0x16d   : > { %v528_v7 = vpop.f32.mrf.mxu0 }
 0x16e   : > { %v529_v16 = vadd.f32 %v528_v7, %v432_v15  ;;  %v548_v18 = vmax.f32 %v534_v12, 0.0 }
 0x16f   : > { %v855_v8 = vpop.f32.mrf.mxu0 }
 0x170   : > { %v544_v9 = vadd.f32 %v855_v8, %v447_v4  ;;  %v547_v3 = vmax.f32 %v529_v16, 0.0 }
 0x171   : > { %v538_v11 = vpop.f32.mrf.mxu0 }
 0x172   : > { %v550_v13 = vmax.f32 %v544_v9, 0.0  ;;  %v539_v14 = vadd.f32 %v538_v11, %v442_v6  ;;  %v752_v9 = vpop.permute.xlu1 %751 }
 0x174   : > { %v549_v17 = vmax.f32 %v539_v14, 0.0  ;;  %856 = vmatprep.subr.mxu1 %v550_v13 }
 0x175   : > { %857 = vmatpush3.msra.mxu1 %v550_v13 }
 0x176   : > { %858 = vmatprep.subr.mxu1 %v549_v17 }
 0x177   : > { %859 = vmatpush3.msra.mxu1 %v549_v17 }
 0x178   : > { %860 = vmatprep.subr.mxu1 %v548_v18 }
 0x179   : > { %861 = vmatpush3.msra.mxu1 %v548_v18 }
 0x17a   : > { %862 = vmatprep.subr.mxu1 %v547_v3 }
 0x17b   : > { %863 = vmatpush3.msra.mxu1 %v547_v3 }
 0x17c   : > { %865 = vmatmul.mubr.msk.f32.vlgmr.msra.gmra.mxu1 %vm449_vm0, %v552_v19 }
 0x17d   : > { %867 = vmatprep.mubr.msk.f32.mxu1 %vm449_vm0, %v553_v20 }
 0x180   : > { %868 = vmatmul.mubr.msk.f32.gmra.mxu1 %vm449_vm0, %v554_v21 }
 0x23c   : > { %v866_v28 = vpop.f32.mrf.mxu1 }
 0x23d   : > { %v663_v31 = vadd.f32 %v866_v28, %v567_v23 }
 0x23e   : > { %v657_v32 = vpop.f32.mrf.mxu1 }
 0x23f   : > { %v658_v33 = vadd.f32 %v657_v32, %v562_v22  ;;  %v677_v36 = vmax.f32 %v663_v31, 0.0 }
 0x240   : > { %v869_v34 = vpop.f32.mrf.mxu1 }
 0x241   : > { %v676_v35 = vmax.f32 %v658_v33, 0.0  ;;  %v673_v37 = vadd.f32 %v869_v34, %v577_v25  ;;  %v705_v44 = vmul.f32 %v692_v27, %v677_v36  ;;  %v734_v45 = vmul.f32 %v723_v29, %v677_v36 }
 0x242   : > { %v667_v38 = vpop.f32.mrf.mxu1 }
 0x243   : > { %v668_v41 = vadd.f32 %v667_v38, %v572_v24  ;;  %v704_v42 = vmul.f32 %v687_v26, %v676_v35  ;;  %v733_v43 = vmul.f32 %v719_v30, %v676_v35  ;;  %v679_v46 = vmax.f32 %v673_v37, 0.0 }
 0x245   : > { %v678_v47 = vmax.f32 %v668_v41, 0.0  ;;  %v708_v48 = vadd.f32 %v705_v44, %v704_v42  ;;  %v737_v49 = vadd.f32 %v734_v45, %v733_v43  ;;  %v707_v54 = vmul.f32 %v702_v52, %v679_v46 }
 0x246   : > { %v736_v55 = vmul.f32 %v731_v53, %v679_v46 }
 0x247   : > { %v706_v50 = vmul.f32 %v697_v39, %v678_v47  ;;  %v735_v51 = vmul.f32 %v727_v40, %v678_v47 }
 0x249   : > { %v709_v56 = vadd.f32 %v708_v48, %v706_v50  ;;  %v738_v57 = vadd.f32 %v737_v49, %v735_v51 }
 0x24b   : > { %v710_v58 = vadd.f32 %v709_v56, %v707_v54  ;;  %v739_v59 = vadd.f32 %v738_v57, %v736_v55 }
 0x24d   : > { %v711_v60 = vrot.slane %v710_v58, 4  ;;  %v740_v61 = vrot.slane %v739_v59, 4 }
 0x24f   : > { %v712_v62 = vadd.f32 %v711_v60, %v710_v58  ;;  %v741_v63 = vadd.f32 %v740_v61, %v739_v59 }
 0x251   : > { %v713_v0 = vrot.slane %v712_v62, 2  ;;  %v742_v1 = vrot.slane %v741_v63, 2 }
 0x253   : > { %v714_v2 = vadd.f32 %v713_v0, %v712_v62  ;;  %v743_v4 = vadd.f32 %v742_v1, %v741_v63 }
 0x255   : > { %v715_v5 = vrot.slane %v714_v2, 1  ;;  %v744_v6 = vrot.slane %v743_v4, 1 }
 0x257   : > { %v716_v7 = vadd.f32 %v715_v5, %v714_v2  ;;  %v745_v8 = vadd.f32 %v744_v6, %v743_v4 }
 0x259   : > { %v747_v10 = vsel %vm746_vm1, %v716_v7, %v745_v8 }
 0x25a   : > { %v754_v11 = vadd.f32 %v752_v9, %v747_v10 }
 0x25c   : > { %755 = vst [vmem:[%s327_s19] sm:$0x3] %v754_v11 }
 0x25d PF: > { %s19_s30 = sadd.s32 1, %s897_s30  }
 0x25e   : > { %p16_p4 = scmp.ge.s32.totalorder %s19_s30, 5  }
 0x260   :  { %18 = sbr.rel (!%p16_p4) target bundleno = 1 (0x1), region = 86 }

</bundles_post_ra>
